<compile_context>
chip_gen: v5e
topology: v5e:2x2
jax: 0.10.0
libtpu: 0.0.40
codegen_flags: <defaults>
</compile_context>

<pallas_src>
import functools
import math

import jax
import jax.numpy as jnp
from jax.experimental import pallas as pl
from jax.experimental.pallas import tpu as pltpu


def _ln_kernel(x_ref, p_ref, o_ref, *, eps, h_valid):
    """LayerNorm over the last axis of one (tile_m, H_pad) row tile.

    x_ref : (tile_m, H_pad) input rows (dtype follows the caller)
    p_ref : (2, H_pad) packed f32 [gamma; beta] (pre-cast in the wrapper)
    o_ref : (tile_m, H_pad) output rows
    """
    x = x_ref[...].astype(jnp.float32)        # stats in f32 (eps=1e-12 < bf16 eps)
    h_pad = x.shape[-1]

    if h_valid == h_pad:
        # Two-pass E[(x-u)^2] form (numerically preferable to E[x^2] - u^2).
        u = jnp.mean(x, axis=-1, keepdims=True)
        d = x - u
        s = jnp.mean(d * d, axis=-1, keepdims=True)
    else:
        # Feature axis was zero-padded to a multiple of 128 in the wrapper:
        # mask the padded lanes out of the statistics.
        lane = jax.lax.broadcasted_iota(jnp.int32, x.shape, 1)
        valid = lane < h_valid
        inv_h = 1.0 / float(h_valid)
        u = jnp.sum(jnp.where(valid, x, 0.0), axis=-1, keepdims=True) * inv_h
        d = jnp.where(valid, x - u, 0.0)
        s = jnp.sum(d * d, axis=-1, keepdims=True) * inv_h

    xn = d * jax.lax.rsqrt(s + eps)
    gamma = p_ref[0:1, :]                     # (1, H_pad), already f32
    beta = p_ref[1:2, :]
    o_ref[...] = (gamma * xn + beta).astype(o_ref.dtype)


def _round_up(a, b):
    return (a + b - 1) // b * b


def _row_tile(n_rows, h_pad, itemsize,
              vmem_budget_bytes=32 * 1024 * 1024, max_tile=2048):
    """Budget-driven row tile (multiple of 8).

    Per-row VMEM footprint: 2 double-buffered input tiles + 2 double-buffered
    output tiles + ~3 f32 temporaries (x upcast, d, xn).
    """
    per_row = h_pad * (2 * itemsize + 2 * itemsize + 3 * 4)
    tile = max(8, min(max_tile, (vmem_budget_bytes // per_row) // 8 * 8))
    tile = min(tile, _round_up(n_rows, 8))
    # Prefer >= 2 grid steps when there is more than one aligned row group so
    # v7x's two TensorCores both get work (and the pipeline can overlap).
    if n_rows > 8 and tile >= n_rows:
        tile = _round_up((n_rows + 1) // 2, 8)
    return tile


@functools.partial(jax.jit, static_argnames=("eps",))
def bert_layer_norm(x, weight, bias, eps=1e-12):
    """x: [..., H]; weight/bias: [H].  LayerNorm over the last axis."""
    *lead, H = x.shape
    N = math.prod(lead) if lead else 1
    x2 = x.reshape(N, H)

    # Lane-density guardrail: keep the output last dim a multiple of 128.
    H_pad = _round_up(H, 128)
    if H_pad != H:
        x2 = jnp.pad(x2, ((0, 0), (0, H_pad - H)))

    # Pack gamma/beta into one resident (2, H_pad) f32 block.
    params = jnp.stack([weight, bias]).astype(jnp.float32)
    if H_pad != H:
        params = jnp.pad(params, ((0, 0), (0, H_pad - H)))

    tile = _row_tile(N, H_pad, x2.dtype.itemsize)
    # Ragged N: partial last block is masked by Pallas -- no jnp.pad / slice.
    grid = (pl.cdiv(N, tile),)

    out = pl.pallas_call(
        functools.partial(_ln_kernel, eps=eps, h_valid=H),
        out_shape=jax.ShapeDtypeStruct((N, H_pad), x.dtype),
        grid_spec=pltpu.PrefetchScalarGridSpec(
            num_scalar_prefetch=0,
            grid=grid,
            in_specs=[
                pl.BlockSpec((tile, H_pad), lambda i: (i, 0)),  # row tile of x
                pl.BlockSpec((2, H_pad), lambda i: (0, 0)),     # gamma/beta
            ],
            out_specs=pl.BlockSpec((tile, H_pad), lambda i: (i, 0)),
        ),
        compiler_params=pltpu.CompilerParams(
            # Row-tile axis is embarrassingly parallel -> megacore sharding.
            dimension_semantics=("parallel",),
            # Let Mosaic use the budget-sized tile (scoped defaults are
            # 16/32 MiB); 48 MiB stays under v7x's 64 MiB physical VMEM.
            vmem_limit_bytes=48 * 1024 * 1024,
        ),
    )(x2, params)

    if H_pad != H:
        out = out[:, :H]
    return out.reshape(*lead, H)


def _reference(x, weight, bias, eps=1e-12):
    x32 = x.astype(jnp.float32)
    u = jnp.mean(x32, axis=-1, keepdims=True)
    s = jnp.mean((x32 - u) ** 2, axis=-1, keepdims=True)
    xn = (x32 - u) / jnp.sqrt(s + eps)
    y = weight.astype(jnp.float32) * xn + bias.astype(jnp.float32)
    return y.astype(x.dtype)


if __name__ == "__main__":
    key = jax.random.PRNGKey(0)
    k1, k2, k3, k4, k5, k6 = jax.random.split(key, 6)

    # Case 1: standard BERT-shaped input (H multiple of 128, even row count).
    H = 768
    x = jax.random.normal(k1, (2, 8, H), dtype=jnp.float32) * 2.0 + 0.5
    gamma = 1.0 + 0.05 * jax.random.normal(k2, (H,), dtype=jnp.float32)
    beta = 0.05 * jax.random.normal(k3, (H,), dtype=jnp.float32)
    out = jax.block_until_ready(bert_layer_norm(x, gamma, beta))
    assert out.shape == x.shape
    assert jnp.allclose(out, _reference(x, gamma, beta), atol=1e-4, rtol=1e-4)

    # Case 2: ragged row count (15 rows) -> partial last row block, no padding copies.
    x2 = jax.random.normal(k4, (3, 5, H), dtype=jnp.float32)
    out2 = jax.block_until_ready(bert_layer_norm(x2, gamma, beta))
    assert out2.shape == x2.shape
    assert jnp.allclose(out2, _reference(x2, gamma, beta), atol=1e-4, rtol=1e-4)

    # Case 3: bf16 I/O (statistics stay in f32 inside the kernel).
    xb = jax.random.normal(k5, (2, 8, H), dtype=jnp.float32).astype(jnp.bfloat16)
    gb = gamma.astype(jnp.bfloat16)
    bb = beta.astype(jnp.bfloat16)
    outb = jax.block_until_ready(bert_layer_norm(xb, gb, bb))
    assert outb.dtype == jnp.bfloat16
    assert jnp.allclose(outb.astype(jnp.float32),
                        _reference(xb, gb, bb).astype(jnp.float32),
                        atol=5e-2, rtol=5e-2)

    # Case 4: H not a multiple of 128 -> lane-pad + masked-statistics guardrail.
    H2 = 96
    x3 = jax.random.normal(k6, (2, 7, H2), dtype=jnp.float32)
    g2 = 1.0 + 0.1 * jnp.arange(H2, dtype=jnp.float32) / H2
    b2 = 0.1 * jnp.ones((H2,), dtype=jnp.float32)
    out3 = jax.block_until_ready(bert_layer_norm(x3, g2, b2))
    assert out3.shape == x3.shape
    assert jnp.allclose(out3, _reference(x3, g2, b2), atol=1e-4, rtol=1e-4)

    print("KERNEL_OK")
</pallas_src>

<mosaic_0001>
module attributes {stable_mosaic.version = 11 : i64} {
  func.func @_ln_kernel(%arg0: i32, %arg1: memref<8x768xf32, #tpu.memory_space<vmem>>, %arg2: memref<2x768xf32, #tpu.memory_space<vmem>>, %arg3: memref<8x768xf32, #tpu.memory_space<vmem>>) attributes {dimension_semantics = [#tpu.dimension_semantics<parallel>], iteration_bounds = array<i64: 2>, scalar_prefetch = 0 : i64, scratch_operands = 0 : i64, tpu.core_type = #tpu.core_type<tc>, window_params = [{transform_indices = @transform_0, window_bounds = array<i64: 8, 768>}, {pipeline_mode = #tpu.pipeline_mode<synchronous>, transform_indices = @transform_1, window_bounds = array<i64: 2, 768>}, {transform_indices = @transform_2, window_bounds = array<i64: 8, 768>}]} {
    %c0 = arith.constant 0 : index
    %c0_0 = arith.constant 0 : index
    %0 = vector.load %arg1[%c0, %c0_0] : memref<8x768xf32, #tpu.memory_space<vmem>>, vector<8x768xf32>
    %cst = arith.constant dense<0.000000e+00> : vector<8xf32>
    %1 = vector.multi_reduction <add>, %0, %cst [1] : vector<8x768xf32> to vector<8xf32>
    %2 = vector.shape_cast %1 : vector<8xf32> to vector<8x1xf32>
    %cst_1 = arith.constant 7.680000e+02 : f32
    %3 = vector.broadcast %cst_1 : f32 to vector<8x1xf32>
    %4 = arith.divf %2, %3 : vector<8x1xf32>
    %5 = vector.broadcast %4 : vector<8x1xf32> to vector<8x768xf32>
    %6 = arith.subf %0, %5 : vector<8x768xf32>
    %7 = arith.mulf %6, %6 : vector<8x768xf32>
    %cst_2 = arith.constant dense<0.000000e+00> : vector<8xf32>
    %8 = vector.multi_reduction <add>, %7, %cst_2 [1] : vector<8x768xf32> to vector<8xf32>
    %9 = vector.shape_cast %8 : vector<8xf32> to vector<8x1xf32>
    %cst_3 = arith.constant 7.680000e+02 : f32
    %10 = vector.broadcast %cst_3 : f32 to vector<8x1xf32>
    %11 = arith.divf %9, %10 : vector<8x1xf32>
    %cst_4 = arith.constant 9.99999996E-13 : f32
    %12 = vector.broadcast %cst_4 : f32 to vector<8x1xf32>
    %13 = arith.addf %11, %12 : vector<8x1xf32>
    %14 = math.rsqrt %13 : vector<8x1xf32>
    %15 = vector.broadcast %14 : vector<8x1xf32> to vector<8x768xf32>
    %16 = arith.mulf %6, %15 : vector<8x768xf32>
    %c0_5 = arith.constant 0 : index
    %c0_6 = arith.constant 0 : index
    %17 = vector.load %arg2[%c0_5, %c0_6] : memref<2x768xf32, #tpu.memory_space<vmem>>, vector<1x768xf32>
    %c1 = arith.constant 1 : index
    %c0_7 = arith.constant 0 : index
    %18 = vector.load %arg2[%c1, %c0_7] : memref<2x768xf32, #tpu.memory_space<vmem>>, vector<1x768xf32>
    %19 = vector.broadcast %17 : vector<1x768xf32> to vector<8x768xf32>
    %20 = arith.mulf %19, %16 : vector<8x768xf32>
    %21 = vector.broadcast %18 : vector<1x768xf32> to vector<8x768xf32>
    %22 = arith.addf %20, %21 : vector<8x768xf32>
    %c0_8 = arith.constant 0 : index
    %c0_9 = arith.constant 0 : index
    %23 = vector.load %arg3[%c0_8, %c0_9] : memref<8x768xf32, #tpu.memory_space<vmem>>, vector<8x768xf32>
    tpu.vector_store %arg3[%c0_8, %c0_9], %22 {strides = array<i32>} : memref<8x768xf32, #tpu.memory_space<vmem>>, vector<8x768xf32>,
    return
  }
  func.func @transform_0(%arg0: i32) -> (i32, i32) {
    %c0_i32 = arith.constant 0 : i32
    %c0_i32_0 = arith.constant 0 : i32
    return %arg0, %c0_i32 : i32, i32
  }
  func.func @transform_1(%arg0: i32) -> (i32, i32) {
    %c0_i32 = arith.constant 0 : i32
    %c0_i32_0 = arith.constant 0 : i32
    %c0_i32_1 = arith.constant 0 : i32
    return %c0_i32, %c0_i32_0 : i32, i32
  }
  func.func @transform_2(%arg0: i32) -> (i32, i32) {
    %c0_i32 = arith.constant 0 : i32
    %c0_i32_0 = arith.constant 0 : i32
    return %arg0, %c0_i32 : i32, i32
  }
}

</mosaic_0001>

<bundles_post_ra>
// kernel: bert_layer_norm.1
= control target key start
LH: loop header
LB: loop body
LE: loop exit
PB: predicated region body
PF: predicated region fallthrough
CT: control target
= control target key end

     0   :  { %7 = vsyncpa [#allocation3], 0  ;;  %s659_s0 = inlined_call_operand.hbm [shape: f32[16,768], index: 0, kind: input, shape index: {}]   ;;  %s660_s1 = inlined_call_operand.vmem [shape: f32[2,768], index: 1, kind: input, shape index: {}]   ;;  %s661_s2 = inlined_call_operand.hbm [shape: f32[16,768], index: 2, kind: output, shape index: {}]  }
   0x1   :  { %9 = vsyncpa [#allocation3 + $0x1], 0 }
   0x2   :  { %10 = vsyncpa [#allocation4], 0 }
   0x3   :  { %12 = vsyncpa [#allocation4 + $0x1], 0  ;;  %s532_s9 = smov 0   ;;  %s534_s10 = smov 0  }
   0x4   :  { %s536_s11 = smov 0   ;;  %s538_s12 = smov 0  }
   0x5 LB: > { %s553_s13 = sadd.s32 4294967295, %s514_s12   ;;  %s354_s14 = sadd.s32 4294967294, %s514_s12   ;;  %s514_s12 = sphi %s538_s12, %s669_s12   ;;  %s510_s11 = sphi %s536_s11, %s668_s11   ;;  %s506_s10 = sphi %s534_s10, %s667_s10   ;;  %s502_s9 = sphi %s532_s9, %s666_s9  }
   0x6   : > { %s557_s15 = sadd.s32 1, %s514_s12   ;;  %s25_s16 = sadd.s32 1, %s510_s11 }
   0x7   : > { %s22_s17 = ssub.s32 %s514_s12, %s557_s15  ;;  %p32_p0 = scmp.ne.s32.totalorder %s510_s11, %s506_s10 }
   0x8   : > { %p23_p1 = scmp.eq.s32.totalorder %s22_s17, 0  ;;  %p33_p2 = scmp.eq.s32.totalorder %s514_s12, 0 }
   0x9   : > { %p38_p3 = scmp.ne.s32.totalorder %s506_s10, %s502_s9  ;;  %p39_p4 = scmp.eq.s32.totalorder %s553_s13, 0 }
   0xa   : > { %s569_s18 = scalar_select %p23_p1, %s510_s11, %s25_s16  }
   0xb   : > { %p34_p5 = por %p33_p2, %p32_p0  ;;  %p571_p6 = por %p39_p4, %p38_p3 }
   0xc   : > { %p83_p7 = scmp.eq.s32.totalorder %s553_s13, 1  ;;  %p89_p8 = scmp.eq.s32.totalorder %s354_s14, 1 }
   0xd   : > { %p356_p9 = scmp.ge.s32.totalorder %s514_s12, 2  ;;  %p379_p10 = scmp.lt.s32.totalorder %s514_s12, 2 }
   0xe   : > { %p578_p11 = por %p83_p7, %p32_p0  ;;  %p582_p12 = por %p89_p8, %p38_p3 }
   0xf   : > { %s112_s22 = sand.u32 1, %s510_s11   ;;  %s364_s23 = smul.u32 48, %s514_s12 }
  0x10   : > { %s363_s24 = smul.u32 48, %s112_s22  ;;  %p591_p13 = pnand %p379_p10, %p34_p5 }
  0x11   : > { %s121_s27 = scalar_lea.hbm %s659_s0, %s364_s23  ;;  %s113_s4 = scalar_lea.sflag [#allocation3], %s112_s22 }
  0x12   : > { %s123_s29 = sshll.u32 %s121_s27, 4  ;;  %s116_s30 = scalar_lea.vmem [#allocation2], %s363_s24  ;;  %s124_s29 = int_to_ptr.hbm [resolvable:$true] %s123_s29 }
  0x13   : > { %s125_s3 = sshll.u32 %s116_s30, 4  ;;  %s418_s5 = sshra.s32 %s124_s29, 4  ;;  %s126_s3 = int_to_ptr.vmem [resolvable:$true] %s125_s3  ;;  %s419_s5 = int_to_ptr.hbm [resolvable:$true] %s418_s5 }
  0x14   : > { %s420_s6 = scalar_lea.hbm %s419_s5, 48  ;;  %p422_p1 = pneg %p591_p13 }
  0x15   : > { %p421_p0 = scmp.ne.s32.totalorder %s419_s5, %s420_s6  ;;  %s425_s14 = scalar_lea.hbm %s659_s0, 96 }
  0x16   : > { %p426_p4 = scmp.lt.s32.totalorder %s419_s5, %s659_s0  ;;  %p427_p5 = scmp.lt.s32.totalorder %s425_s14, %s420_s6 }
  0x17   : > { %p423_p2 = pnand %p422_p1, %p421_p0 }
  0x18   : > { %p428_p7 = por %p427_p5, %p426_p4 }
  0x19   : > { %p424_p3 = pneg %p423_p2 }
  0x1b   : > { %p429_p8 = pnand %p428_p7, %p424_p3 }
  0x1d   : > { %432 = shalt.err (!%p429_p8)
}
  0x1e   : > { %374 = dma.hbm_to_vmem [thread:$0]  (!%p591_p13), %s124_s29, 768, %s126_s3, %s113_s4  }
  0x1f   : > { %p358_p10 = scmp.ge.s32.totalorder %s514_s12, 1  ;;  %p130_p0 = scmp.lt.s32.totalorder %s514_s12, 3 }
  0x21   : > { %p131_p1 = pnand %p358_p10, %p130_p0 }
  0x22   : > { %s608_s22 = sand.u32 (!%p131_p1), 1, %s506_s10  }
  0x23   : > { %134 = sbr.rel (%p131_p1) target bundleno = 336 (0x150), region = 28  ;;  %s137_s24 = scalar_lea.sflag (!%p131_p1), [#allocation3], %s608_s22 }
  0x24   : > { %s365_s23 = smul.u32 (!%p131_p1), 48, %s608_s22 }
  0x26   : > { %s140_s25 = scalar_lea.vmem (!%p131_p1), [#allocation2], %s365_s23 }
  0x28   : > { %493 = dma.done.wait (%p571_p6), %s137_s24, 768  }
  0x29   : > { %495 = vsyncadd (%p571_p6), %s137_s24, 4294966528  ;;  %v162_v0 = vld [vmem:[%s140_s25] sm:$0xff]  ;;  %v163_v1 = vld [vmem:[%s140_s25 + $0x8] sm:$0xff]  ;;  %v516_v11 = vmov 768.0   ;;  %s366_s29 = smul.u32 48, %s553_s13  ;;  %s161_s4 = scalar_lea.vmem [#allocation5], %s365_s23 }
  0x2a   : > { %v164_v2 = vld [vmem:[%s140_s25 + $0x10] sm:$0xff]  ;;  %v168_v3 = vadd.f32 %v163_v1, %v162_v0  ;;  %v165_v4 = vld [vmem:[%s140_s25 + $0x18] sm:$0xff]  ;;  %v166_v6 = vld [vmem:[%s140_s25 + $0x20] sm:$0xff]  ;;  %414 = vrcp.f32 %v516_v11  ;;  %s281_s5 = sshll.u32 %s161_s4, 4  ;;  %s268_s7 = scalar_lea.sflag [#allocation4], %s608_s22  ;;  %s282_s5 = int_to_ptr.vmem [resolvable:$true] %s281_s5 }
  0x2b   : > { %v167_v8 = vld [vmem:[%s140_s25 + $0x28] sm:$0xff]  ;;  %s279_s13 = scalar_lea.hbm %s661_s2, %s366_s29  ;;  %s468_s23 = scalar_lea.hbm %s661_s2, 96 }
  0x2c   : > { %v169_v5 = vadd.f32 %v168_v3, %v164_v2  ;;  %v220_v44 = vld [vmem:[%s660_s1] ss:$2 sm:$0x3f]  ;;  %v359_v46 = vld [vmem:[%s660_s1 + $0x1] ss:$2 sm:$0x3f] }
  0x2d   : > { %v224_v47 = vperm.slane %v220_v44, 0  ;;  %v225_v48 = vperm.slane %v220_v44, 1  ;;  %v226_v50 = vperm.slane %v220_v44, 2  ;;  %v227_v51 = vperm.slane %v220_v44, 3  ;;  %s283_s6 = sshll.u32 %s279_s13, 4  ;;  %s284_s6 = int_to_ptr.hbm [resolvable:$true] %s283_s6 }
  0x2e   : > { %v170_v7 = vadd.f32 %v169_v5, %v165_v4  ;;  %v228_v52 = vperm.slane %v220_v44, 4  ;;  %v229_v53 = vperm.slane %v220_v44, 5  ;;  %v243_v54 = vperm.slane %v359_v46, 0  ;;  %s462_s8 = sshra.s32 %s284_s6, 4  ;;  %s463_s8 = int_to_ptr.hbm [resolvable:$true] %s462_s8 }
  0x2f   : > { %v244_v55 = vperm.slane %v359_v46, 1  ;;  %v245_v56 = vperm.slane %v359_v46, 2  ;;  %v246_v62 = vperm.slane %v359_v46, 3  ;;  %v247_v63 = vperm.slane %v359_v46, 4  ;;  %s464_s14 = scalar_lea.hbm %s463_s8, 48  ;;  %p469_p3 = scmp.lt.s32.totalorder %s463_s8, %s661_s2 }
  0x30   : > { %v171_v9 = vadd.f32 %v170_v7, %v166_v6  ;;  %v415_v12 = vpop.eup %414  ;;  %p465_p6 = scmp.ne.s32.totalorder %s463_s8, %s464_s14  ;;  %p470_p4 = scmp.lt.s32.totalorder %s468_s23, %s464_s14 }
  0x31   : > { %v176_v13 = vmul.f32 768.0, %v415_v12  ;;  %vm180_vm0 = vweird.f32 %v415_v12 }
  0x32   : > { %v172_v10 = vadd.f32 %v171_v9, %v167_v8  ;;  %p466_p13 = pnand %p465_p6, %p578_p11  ;;  %p471_p5 = por %p470_p4, %p469_p3 }
  0x33   : > { %v177_v14 = vsub.f32 1.0, %v176_v13 }
  0x34   : > { %173 = vadd.xlane.f32.xlu0 %v172_v10  ;;  %p467_p2 = pneg %p466_p13 }
  0x35   : > { %v178_v15 = vmul.f32 %v415_v12, %v177_v14 }
  0x36   : > { %p472_p7 = pnand %p471_p5, %p467_p2 }
  0x37   : > { %v179_v16 = vadd.f32 %v415_v12, %v178_v15 }
  0x39   : > { %v181_v17 = vsel %vm180_vm0, %v415_v12, %v179_v16 }
  0xa7   : > { %v174_v18 = vpop.xlane.xlu0 %173 }
  0xa8   : > { %v182_v19 = vmul.f32 %v181_v17, %v174_v18 }
  0xaa   : > { %v183_v20 = vsub.f32 %v162_v0, %v182_v19  ;;  %v184_v21 = vsub.f32 %v163_v1, %v182_v19  ;;  %v185_v22 = vsub.f32 %v164_v2, %v182_v19  ;;  %v186_v23 = vsub.f32 %v165_v4, %v182_v19 }
  0xab   : > { %v187_v26 = vsub.f32 %v166_v6, %v182_v19  ;;  %v188_v29 = vsub.f32 %v167_v8, %v182_v19  ;;  %v248_v6 = vperm.slane %v359_v46, 5 }
  0xac   : > { %v189_v24 = vmul.f32 %v183_v20, %v183_v20  ;;  %v190_v25 = vmul.f32 %v184_v21, %v184_v21  ;;  %v191_v27 = vmul.f32 %v185_v22, %v185_v22  ;;  %v192_v30 = vmul.f32 %v186_v23, %v186_v23 }
  0xad   : > { %v193_v32 = vmul.f32 %v187_v26, %v187_v26  ;;  %v194_v34 = vmul.f32 %v188_v29, %v188_v29 }
  0xae   : > { %v195_v28 = vadd.f32 %v190_v25, %v189_v24 }
  0xb0   : > { %v196_v31 = vadd.f32 %v195_v28, %v191_v27 }
  0xb2   : > { %v197_v33 = vadd.f32 %v196_v31, %v192_v30 }
  0xb4   : > { %v198_v35 = vadd.f32 %v197_v33, %v193_v32 }
  0xb6   : > { %v199_v36 = vadd.f32 %v198_v35, %v194_v34 }
  0xb8   : > { %200 = vadd.xlane.f32.xlu0 %v199_v36 }
 0x12b   : > { %v201_v37 = vpop.xlane.xlu0 %200 }
 0x12c   : > { %v202_v38 = vmul.f32 %v201_v37, %v181_v17 }
 0x12e   : > { %v203_v39 = vadd.f32 1e-12, %v202_v38 }
 0x130   : > { %416 = vrsqrt.f32 %v203_v39  ;;  %vm210_vm2 = vweird.f32 %v203_v39 }
 0x136   : > { %v417_v40 = vpop.eup %416 }
 0x137   : > { %v205_v41 = vmul.f32 %v417_v40, %v203_v39  ;;  %vm211_vm1 = vweird.f32 %v417_v40 }
 0x138   : > { %vm212_vm3 = vmor %vm210_vm2, %vm211_vm1 }
 0x139   : > { %v206_v42 = vmul.f32 %v417_v40, %v205_v41 }
 0x13b   : > { %v207_v43 = vmul.f32 0.5, %v206_v42 }
 0x13d   : > { %v208_v45 = vsub.f32 1.5, %v207_v43 }
 0x13f   : > { %v209_v49 = vmul.f32 %v417_v40, %v208_v45 }
 0x141   : > { %v213_v57 = vsel %vm212_vm3, %v417_v40, %v209_v49 }
 0x142   : > { %v214_v58 = vmul.f32 %v213_v57, %v183_v20  ;;  %v215_v59 = vmul.f32 %v213_v57, %v184_v21  ;;  %v216_v60 = vmul.f32 %v213_v57, %v185_v22  ;;  %v217_v61 = vmul.f32 %v213_v57, %v186_v23 }
 0x143   : > { %v218_v0 = vmul.f32 %v213_v57, %v187_v26  ;;  %v219_v1 = vmul.f32 %v213_v57, %v188_v29 }
 0x144   : > { %v236_v2 = vmul.f32 %v224_v47, %v214_v58  ;;  %v237_v3 = vmul.f32 %v225_v48, %v215_v59  ;;  %v238_v4 = vmul.f32 %v226_v50, %v216_v60  ;;  %v239_v5 = vmul.f32 %v227_v51, %v217_v61 }
 0x145   : > { %v240_v7 = vmul.f32 %v228_v52, %v218_v0  ;;  %v241_v8 = vmul.f32 %v229_v53, %v219_v1 }
 0x146   : > { %v255_v9 = vadd.f32 %v243_v54, %v236_v2  ;;  %v256_v10 = vadd.f32 %v244_v55, %v237_v3  ;;  %v257_v11 = vadd.f32 %v245_v56, %v238_v4  ;;  %v258_v12 = vadd.f32 %v246_v62, %v239_v5 }
 0x147   : > { %v259_v13 = vadd.f32 %v247_v63, %v240_v7  ;;  %v260_v14 = vadd.f32 %v248_v6, %v241_v8 }
 0x148   : > { %261 = vst [vmem:[%s161_s4] sm:$0xff] %v255_v9 }
 0x149   : > { %262 = vst [vmem:[%s161_s4 + $0x8] sm:$0xff] %v256_v10 }
 0x14a   : > { %263 = vst [vmem:[%s161_s4 + $0x10] sm:$0xff] %v257_v11 }
 0x14b   : > { %264 = vst [vmem:[%s161_s4 + $0x18] sm:$0xff] %v258_v12 }
 0x14c   : > { %265 = vst [vmem:[%s161_s4 + $0x20] sm:$0xff] %v259_v13 }
 0x14d   : > { %266 = vst [vmem:[%s161_s4 + $0x28] sm:$0xff] %v260_v14 }
 0x14e   : > { %475 = shalt.err (!%p472_p7)
}
 0x14f   : > { %369 = dma.vmem_to_hbm [thread:$0]  (%p578_p11), %s282_s5, 768, %s284_s6, %s268_s7  }
 0x150 PF: > { %s295_s22 = sand.u32 1, %s502_s9   ;;  %p376_p8 = pnand %p356_p9, %p582_p12 }
 0x151   : > { %s296_s19 = scalar_lea.sflag [#allocation4], %s295_s22 }
 0x152   : > { %p377_p10 = pneg %p376_p8 }
 0x154   : > { %497 = dma.done.wait (%p377_p10), %s296_s19, 768  }
 0x155   : > { %499 = vsyncadd (%p377_p10), %s296_s19, 4294966528  ;;  %p15_p0 = scmp.ge.s32.totalorder %s557_s15, 4   ;;  %s666_s9 = smov %s506_s10 }
 0x156   : > { %s667_s10 = smov %s510_s11  ;;  %s668_s11 = smov %s569_s18 }
 0x157   : > { %s669_s12 = smov %s557_s15  ;;  %17 = sbr.rel (!%p15_p0) target bundleno = 5 (0x5), region = 74 }
 0x15c   :  { %302 = vsyncpa [#allocation3], 1 }
 0x15d   :  { %304 = vsyncpa [#allocation3 + $0x1], 1 }
 0x15e   :  { %305 = vsyncpa [#allocation4], 1 }
 0x15f   :  { %307 = vsyncpa [#allocation4 + $0x1], 1 }

</bundles_post_ra>
